<compile_context>
chip_gen: v6e
topology: v6e:2x2x1
jax: 0.10.0
libtpu: 0.0.40
codegen_flags: <defaults>
</compile_context>

<pallas_src>
import jax
import jax.numpy as jnp
from jax import lax
from jax.experimental import pallas as pl
from jax.experimental.pallas import tpu as pltpu

LANE = 128


def _round_up(x: int, m: int) -> int:
    return ((x + m - 1) // m) * m


def _sublane(dtype) -> int:
    # 32-bit -> 8 rows/vreg, 16-bit -> 16, 8-bit -> 32 (sub-32-bit packs along sublanes).
    return max(8, 32 // jnp.dtype(dtype).itemsize)


def _vmem_capacity_bytes() -> int:
    try:
        return int(pltpu.get_tpu_info().vmem_capacity_bytes)
    except Exception:
        return 64 << 20  # conservative default = v7x per-TensorCore VMEM


# ---------------------------------------------------------------------------
# Kernels
# ---------------------------------------------------------------------------
# Contract last dim of x (K) with last dim of w (K): weight stays in torch
# [D_out, D_in] layout, so no transpose pass over the weight in the wrapper.
_DN = (((1,), (1,)), ((), ()))


def _linear_kernel_single_k(x_ref, w_ref, b_ref, o_ref):
    # x: (tm, K), w: (tn, K), b: (1, tn) f32, o: (tm, tn).
    # Whole reduction in one MXU call: no accumulator VMEM traffic, no pl.when.
    acc = lax.dot_general(x_ref[...], w_ref[...], _DN,
                          preferred_element_type=jnp.float32)
    o_ref[...] = (acc + b_ref[...]).astype(o_ref.dtype)


def _linear_kernel_multi_k(x_ref, w_ref, b_ref, o_ref, acc_ref):
    # K split across grid axis 2; f32 accumulator resident across it.
    k = pl.program_id(2)

    @pl.when(k == 0)
    def _():
        acc_ref[...] = jnp.zeros_like(acc_ref)

    acc_ref[...] += lax.dot_general(x_ref[...], w_ref[...], _DN,
                                    preferred_element_type=jnp.float32)

    @pl.when(k == pl.num_programs(2) - 1)
    def _():
        o_ref[...] = (acc_ref[...] + b_ref[...]).astype(o_ref.dtype)


# ---------------------------------------------------------------------------
# Tile planning
# ---------------------------------------------------------------------------
def _step_bytes(tm, tn, tk, x_isz, w_isz, o_isz, with_acc):
    # Double-buffered x / w / bias / out blocks (+ f32 accumulator if present).
    b = 2 * (tm * tk * x_isz + tn * tk * w_isz + tn * 4 + tm * tn * o_isz)
    if with_acc:
        b += tm * tn * 4
    return b


def _plan_tiles(D_in, D_out, x_isz, w_isz, o_isz, budget, max_tm):
    K_full = _round_up(D_in, LANE)
    N_full = _round_up(D_out, LANE)

    # tn candidates: 128-multiples dividing N_full exactly (zero extra N
    # padding).  Prefer a proper divisor (>=2 N tiles so both v7x TensorCores
    # get work even with a single M tile), and prefer 256-multiples (full
    # occupancy of the 256-wide MXU on v6e/v7x).
    divisors = [d for d in range(N_full, 0, -LANE) if N_full % d == 0]
    proper = [d for d in divisors if d < N_full]
    tn_order = ([d for d in proper if d % 256 == 0]
                + [d for d in proper if d % 256 != 0]
                + [N_full])

    tm_cap = max(16, (max_tm // 16) * 16)
    while True:
        # Preferred plan: whole K in one block -> 2-D grid, no accumulator.
        for tn in tn_order:
            if _step_bytes(tm_cap, tn, K_full, x_isz, w_isz, o_isz, False) <= budget:
                return dict(tm_cap=tm_cap, tn=tn, tk=K_full,
                            K_pad=K_full, N_pad=N_full, single_k=True)
        # Fallback: split K, f32 accumulator resident across the K grid axis.
        for tn in tn_order:
            for tk in (2048, 1024, 512, 256, 128):
                if tk >= K_full:
                    continue
                if _step_bytes(tm_cap, tn, tk, x_isz, w_isz, o_isz, True) <= budget:
                    return dict(tm_cap=tm_cap, tn=tn, tk=tk,
                                K_pad=_round_up(D_in, tk), N_pad=N_full,
                                single_k=False)
        if tm_cap <= 16:
            raise ValueError(
                f"LinearClassifier: no tile plan fits VMEM budget ({budget} bytes)")
        tm_cap = max(16, ((tm_cap // 2) // 16) * 16)


def _choose_tm(B, sub_m, tm_cap):
    """Pick the M tile.  Single M tile when it fits (weight streams once);
    otherwise minimize M-padding waste among sublane-valid candidates."""
    M_min = _round_up(B, sub_m)
    if M_min <= tm_cap:
        return M_min, M_min
    best = None
    floor = max(sub_m, min(128, tm_cap))
    tm = tm_cap
    while tm >= floor:
        M_pad = _round_up(B, tm)
        key = (M_pad - B, -tm)
        if best is None or key < best[0]:
            best = (key, tm, M_pad)
        tm -= sub_m
    return best[1], best[2]


# ---------------------------------------------------------------------------
# Public API
# ---------------------------------------------------------------------------
def make_linear_classifier(weight, bias, *, use_bf16=None, force_pallas=False,
                           max_tm=512, vmem_budget_bytes=None):
    """Build forward(x) = x @ weight.T + bias (torch.nn.Linear semantics).

    weight: [D_out, D_in] (torch layout, kept as-is), bias: [D_out].
    Weight padding / dtype cast are hoisted here and done once.
    """
    weight = jnp.asarray(weight)
    bias = jnp.asarray(bias)
    D_out, D_in = weight.shape

    # bf16 operands (f32 accumulation kept) only for large weights, where the
    # kernel is weight-bandwidth bound; expect ~1e-2 abs error vs f32 then.
    if use_bf16 is None:
        use_bf16 = (weight.dtype == jnp.float32) and (D_in * D_out >= (1 << 21))
    op_dtype = jnp.bfloat16 if use_bf16 else weight.dtype
    # TODO(synk): int8 weights (v5e/v6e MXU int path) / fp8 (v7x) quantized
    # variants not implemented; bf16 is the only narrow-operand mode here.

    vmem_cap = _vmem_capacity_bytes()
    budget = int(vmem_budget_bytes) if vmem_budget_bytes else int(0.70 * vmem_cap)

    x_isz = w_isz = jnp.dtype(op_dtype).itemsize
    o_isz = 4  # plan for the worst-case (f32) output itemsize

    plan = _plan_tiles(D_in, D_out, x_isz, w_isz, o_isz, budget, max_tm)
    tn, tk = plan["tn"], plan["tk"]
    K_pad, N_pad = plan["K_pad"], plan["N_pad"]
    tm_cap, single_k = plan["tm_cap"], plan["single_k"]

    # One-time (hoisted) parameter preprocessing: cast + zero-pad, no transpose.
    w_p = jnp.pad(weight.astype(op_dtype), ((0, N_pad - D_out), (0, K_pad - D_in)))
    b_p = jnp.pad(bias.astype(jnp.float32), (0, N_pad - D_out)).reshape(1, N_pad)

    # Generation-aware VMEM limit: headroom over worst-case tile bytes, never
    # above ~90% of physical VMEM (64 MiB on v7x, 128 MiB on v5e/v6e).
    worst = _step_bytes(tm_cap, tn, tk, x_isz, w_isz, o_isz, not single_k)
    vmem_limit = int(min(0.9 * vmem_cap, max(32 << 20, int(1.5 * worst))))
    vmem_limit = max(vmem_limit, worst)

    use_xla_fallback = (not force_pallas) and (D_in < 64 or D_out < 64)

    @jax.jit
    def _run(x, w_arr, b_arr):
        B = x.shape[0]
        out_dtype = x.dtype
        sub_m = max(_sublane(op_dtype), _sublane(out_dtype))
        tm, M_pad = _choose_tm(B, sub_m, tm_cap)
        x_p = jnp.pad(x.astype(op_dtype), ((0, M_pad - B), (0, K_pad - D_in)))

        if single_k:
            out_p = pl.pallas_call(
                _linear_kernel_single_k,
                out_shape=jax.ShapeDtypeStruct((M_pad, N_pad), out_dtype),
                grid=(M_pad // tm, N_pad // tn),
                in_specs=[
                    pl.BlockSpec((tm, tk), lambda i, j: (i, 0)),
                    pl.BlockSpec((tn, tk), lambda i, j: (j, 0)),
                    pl.BlockSpec((1, tn), lambda i, j: (0, j)),
                ],
                out_specs=pl.BlockSpec((tm, tn), lambda i, j: (i, j)),
                compiler_params=pltpu.CompilerParams(
                    dimension_semantics=("parallel", "parallel"),
                    vmem_limit_bytes=vmem_limit,
                ),
            )(x_p, w_arr, b_arr)
        else:
            out_p = pl.pallas_call(
                _linear_kernel_multi_k,
                out_shape=jax.ShapeDtypeStruct((M_pad, N_pad), out_dtype),
                grid=(M_pad // tm, N_pad // tn, K_pad // tk),
                in_specs=[
                    pl.BlockSpec((tm, tk), lambda i, j, k: (i, k)),
                    pl.BlockSpec((tn, tk), lambda i, j, k: (j, k)),
                    pl.BlockSpec((1, tn), lambda i, j, k: (0, j)),
                ],
                out_specs=pl.BlockSpec((tm, tn), lambda i, j, k: (i, j)),
                scratch_shapes=[pltpu.VMEM((tm, tn), jnp.float32)],
                compiler_params=pltpu.CompilerParams(
                    dimension_semantics=("parallel", "parallel", "arbitrary"),
                    vmem_limit_bytes=vmem_limit,
                ),
            )(x_p, w_arr, b_arr)

        return out_p[:B, :D_out]

    def forward(x):
        if use_xla_fallback:
            # Tiny classifier dims (module default 2->3): a padded 128-wide
            # Pallas matmul is pure overhead -- let XLA handle it directly.
            return x @ weight.T + bias
        return _run(x, w_p, b_p)

    return forward


def linear_classifier(x, weight, bias, **kwargs):
    """One-shot convenience wrapper. Prefer make_linear_classifier(...) in real
    code so the weight preprocessing is hoisted out of the hot path."""
    return make_linear_classifier(weight, bias, **kwargs)(x)


if __name__ == "__main__":
    key = jax.random.PRNGKey(0)

    # --- 1) Module-default tiny shapes (input_dim=2, output_dim=3, batch=8),
    #        Pallas path forced so the kernel itself is exercised. ----------
    input_dim, output_dim, batch = 2, 3, 8
    kx, kw, kb, k2 = jax.random.split(key, 4)
    bound = 1.0 / (input_dim ** 0.5)  # torch.nn.Linear default init range
    weight = jax.random.uniform(kw, (output_dim, input_dim), jnp.float32,
                                minval=-bound, maxval=bound)
    bias = jax.random.uniform(kb, (output_dim,), jnp.float32,
                              minval=-bound, maxval=bound)
    x = jax.random.normal(kx, (batch, input_dim), jnp.float32)

    fwd_tiny = make_linear_classifier(weight, bias, force_pallas=True)
    y = jax.block_until_ready(fwd_tiny(x))
    y_ref = x @ weight.T + bias
    assert y.shape == (batch, output_dim)
    assert jnp.allclose(y, y_ref, atol=1e-5, rtol=1e-5)

    # Default (un-forced) path uses the small-shape XLA fallback.
    y_fb = jax.block_until_ready(make_linear_classifier(weight, bias)(x))
    assert jnp.allclose(y_fb, y_ref, atol=1e-5, rtol=1e-5)

    # --- 2) Larger shape: single-K 2-D kernel, single M tile (weight streams
    #        from HBM exactly once). --------------------------------------
    B2, Din2, Dout2 = 384, 1024, 640
    kx2, kw2, kb2 = jax.random.split(k2, 3)
    b2 = 1.0 / (Din2 ** 0.5)
    w2 = jax.random.uniform(kw2, (Dout2, Din2), jnp.float32, minval=-b2, maxval=b2)
    bias2 = jax.random.uniform(kb2, (Dout2,), jnp.float32, minval=-b2, maxval=b2)
    x2 = jax.random.normal(kx2, (B2, Din2), jnp.float32)
    y2_ref = x2 @ w2.T + bias2

    fwd_big = make_linear_classifier(w2, bias2)
    y2 = jax.block_until_ready(fwd_big(x2))
    assert y2.shape == (B2, Dout2)
    assert jnp.allclose(y2, y2_ref, atol=1e-4, rtol=1e-4)

    # --- 3) Same shape with a tiny forced VMEM budget: exercises the
    #        multi-K accumulator kernel path. -----------------------------
    fwd_acc = make_linear_classifier(w2, bias2, vmem_budget_bytes=2 << 20)
    y3 = jax.block_until_ready(fwd_acc(x2))
    assert jnp.allclose(y3, y2_ref, atol=1e-4, rtol=1e-4)

    print("KERNEL_OK")
</pallas_src>

<mosaic_0001>
module attributes {stable_mosaic.version = 11 : i64} {
  func.func @_linear_kernel_single_k(%arg0: i32, %arg1: i32, %arg2: memref<8x128xf32, #tpu.memory_space<vmem>>, %arg3: memref<128x128xf32, #tpu.memory_space<vmem>>, %arg4: memref<1x128xf32, #tpu.memory_space<vmem>>, %arg5: memref<8x128xf32, #tpu.memory_space<vmem>>) attributes {dimension_semantics = [#tpu.dimension_semantics<parallel>, #tpu.dimension_semantics<parallel>], iteration_bounds = array<i64: 1, 1>, scalar_prefetch = 0 : i64, scratch_operands = 0 : i64, tpu.core_type = #tpu.core_type<tc>, window_params = [{transform_indices = @transform_0, window_bounds = array<i64: 8, 128>}, {transform_indices = @transform_1, window_bounds = array<i64: 128, 128>}, {transform_indices = @transform_2, window_bounds = array<i64: 1, 128>}, {transform_indices = @transform_3, window_bounds = array<i64: 8, 128>}]} {
    %c0 = arith.constant 0 : index
    %c0_0 = arith.constant 0 : index
    %0 = vector.load %arg2[%c0, %c0_0] : memref<8x128xf32, #tpu.memory_space<vmem>>, vector<8x128xf32>
    %c0_1 = arith.constant 0 : index
    %c0_2 = arith.constant 0 : index
    %1 = vector.load %arg3[%c0_1, %c0_2] : memref<128x128xf32, #tpu.memory_space<vmem>>, vector<128x128xf32>
    %cst = arith.constant dense<0.000000e+00> : vector<8x128xf32>
    %2 = tpu.matmul %0, %1, %cst {dimension_numbers = #tpu.dot_dimension_numbers<[1], [1], [0], [0], [0, 0, 1, 0], [], []>} : vector<8x128xf32>, vector<128x128xf32>, vector<8x128xf32> -> vector<8x128xf32>
    %c0_3 = arith.constant 0 : index
    %c0_4 = arith.constant 0 : index
    %3 = vector.load %arg4[%c0_3, %c0_4] : memref<1x128xf32, #tpu.memory_space<vmem>>, vector<1x128xf32>
    %4 = vector.broadcast %3 : vector<1x128xf32> to vector<8x128xf32>
    %5 = arith.addf %2, %4 : vector<8x128xf32>
    %c0_5 = arith.constant 0 : index
    %c0_6 = arith.constant 0 : index
    %6 = vector.load %arg5[%c0_5, %c0_6] : memref<8x128xf32, #tpu.memory_space<vmem>>, vector<8x128xf32>
    tpu.vector_store %arg5[%c0_5, %c0_6], %5 {strides = array<i32>} : memref<8x128xf32, #tpu.memory_space<vmem>>, vector<8x128xf32>,
    return
  }
  func.func @transform_0(%arg0: i32, %arg1: i32) -> (i32, i32) {
    %c0_i32 = arith.constant 0 : i32
    %c0_i32_0 = arith.constant 0 : i32
    return %arg0, %c0_i32 : i32, i32
  }
  func.func @transform_1(%arg0: i32, %arg1: i32) -> (i32, i32) {
    %c0_i32 = arith.constant 0 : i32
    %c0_i32_0 = arith.constant 0 : i32
    return %arg1, %c0_i32 : i32, i32
  }
  func.func @transform_2(%arg0: i32, %arg1: i32) -> (i32, i32) {
    %c0_i32 = arith.constant 0 : i32
    %c0_i32_0 = arith.constant 0 : i32
    return %c0_i32, %arg1 : i32, i32
  }
  func.func @transform_3(%arg0: i32, %arg1: i32) -> (i32, i32) {
    %c0_i32 = arith.constant 0 : i32
    return %arg0, %arg1 : i32, i32
  }
}

</mosaic_0001>

<bundles_post_ra>
// kernel: _run.1
= control target key start
LH: loop header
LB: loop body
LE: loop exit
PB: predicated region body
PF: predicated region fallthrough
CT: control target
= control target key end

     0   :  { %8 = vsyncpa [#allocation3], 0  ;;  %s208_s12 = smov [#allocation2]   ;;  %s245_s0 = inlined_call_operand.vmem [shape: f32[8,128], index: 0, kind: input, shape index: {}]   ;;  %s246_s1 = inlined_call_operand.hbm [shape: f32[128,128], index: 1, kind: input, shape index: {}]   ;;  %s247_s2 = inlined_call_operand.vmem [shape: f32[1,128], index: 2, kind: input, shape index: {}]   ;;  %s248_s3 = inlined_call_operand.vmem [shape: f32[8,128], index: 3, kind: output, shape index: {}]  }
   0x1   :  { %s16_s13 = sshll.u32 %s208_s12, 4  ;;  %s17_s13 = int_to_ptr.vmem [resolvable:$true] %s16_s13 }
   0x2   :  { %s194_s14 = scalar_lea.vmem %s17_s13, 2048  ;;  %p199_p1 = scmp.lt.s32.totalorder %s17_s13, %s17_s13 }
   0x3   :  { %p195_p0 = scmp.ne.s32.totalorder %s17_s13, %s194_s14  ;;  %p200_p2 = scmp.lt.s32.totalorder %s194_s14, %s194_s14 }
   0x5   :  { %p201_p3 = por %p200_p2, %p199_p1 }
   0x7   :  { %p202_p4 = pnand %p201_p3, %p195_p0 }
   0x9   :  { %205 = shalt.err (!%p202_p4)
}
   0xa   :  { %s209_s15 = smov 128   ;;  %s210_s16 = smov 8  }
   0xb   :  { %22 = dma.hbm_to_vmem [thread:$0]  %s246_s1, 2048, %s17_s13, [#allocation3], %s209_s15, %s209_s15, %s210_s16  }
   0xc   :  { %206 = dma.done.wait [#allocation3], 2048  }
   0xd   :  { %207 = vsyncadd [#allocation3], 4294965248  ;;  %v211_v0 = vmov 0.0   ;;  %vm212_vm0 = vmmov 0   ;;  %v44_v1 = vld [vmem:[#allocation2 + $0x78] sm:$0xff]  ;;  %v43_v2 = vld [vmem:[#allocation2 + $0x70] sm:$0xff] }
   0xe   :  { %146 = vmatprep.subr.mxu0 %v211_v0  ;;  %178 = vmatprep.mubr.msk.f32.mxu0 %vm212_vm0, %v211_v0  ;;  %v42_v3 = vld [vmem:[#allocation2 + $0x68] sm:$0xff]  ;;  %v41_v4 = vld [vmem:[#allocation2 + $0x60] sm:$0xff]  ;;  %v40_v5 = vld [vmem:[#allocation2 + $0x58] sm:$0xff] }
   0xf   :  { %147 = vmatpush3.xpose.msra.mxu0 %v44_v1  ;;  %v39_v6 = vld [vmem:[#allocation2 + $0x50] sm:$0xff]  ;;  %v38_v7 = vld [vmem:[#allocation2 + $0x48] sm:$0xff]  ;;  %v37_v8 = vld [vmem:[#allocation2 + $0x40] sm:$0xff] }
  0x10   :  { %148 = vmatprep.subr.mxu0 %v211_v0  ;;  %v36_v9 = vld [vmem:[#allocation2 + $0x38] sm:$0xff]  ;;  %v35_v10 = vld [vmem:[#allocation2 + $0x30] sm:$0xff]  ;;  %v34_v11 = vld [vmem:[#allocation2 + $0x28] sm:$0xff] }
  0x11   :  { %v33_v12 = vld [vmem:[#allocation2 + $0x20] sm:$0xff]  ;;  %v32_v13 = vld [vmem:[#allocation2 + $0x18] sm:$0xff]  ;;  %v31_v14 = vld [vmem:[#allocation2 + $0x10] sm:$0xff] }
  0x12   :  { %v30_v15 = vld [vmem:[#allocation2 + $0x8] sm:$0xff]  ;;  %v29_v16 = vld [vmem:[#allocation2] sm:$0xff] }
  0x13   :  { %149 = vmatpush3.xpose.msra.mxu0 %v43_v2  ;;  %v28_v17 = vld [vmem:[%s245_s0] sm:$0xff] }
  0x14   :  { %150 = vmatprep.subr.mxu0 %v211_v0  ;;  %v128_v18 = vld [vmem:[%s247_s2] ss:$0 sm:$0xff] }
  0x17   :  { %151 = vmatpush3.xpose.msra.mxu0 %v42_v3 }
  0x18   :  { %152 = vmatprep.subr.mxu0 %v211_v0 }
  0x1b   :  { %153 = vmatpush3.xpose.msra.mxu0 %v41_v4 }
  0x1c   :  { %154 = vmatprep.subr.mxu0 %v211_v0 }
  0x1f   :  { %155 = vmatpush3.xpose.msra.mxu0 %v40_v5 }
  0x20   :  { %156 = vmatprep.subr.mxu0 %v211_v0 }
  0x23   :  { %157 = vmatpush3.xpose.msra.mxu0 %v39_v6 }
  0x24   :  { %158 = vmatprep.subr.mxu0 %v211_v0 }
  0x27   :  { %159 = vmatpush3.xpose.msra.mxu0 %v38_v7 }
  0x28   :  { %160 = vmatprep.subr.mxu0 %v211_v0 }
  0x2b   :  { %161 = vmatpush3.xpose.msra.mxu0 %v37_v8 }
  0x2c   :  { %162 = vmatprep.subr.mxu0 %v211_v0 }
  0x2f   :  { %163 = vmatpush3.xpose.msra.mxu0 %v36_v9 }
  0x30   :  { %164 = vmatprep.subr.mxu0 %v211_v0 }
  0x33   :  { %165 = vmatpush3.xpose.msra.mxu0 %v35_v10 }
  0x34   :  { %166 = vmatprep.subr.mxu0 %v211_v0 }
  0x37   :  { %167 = vmatpush3.xpose.msra.mxu0 %v34_v11 }
  0x38   :  { %168 = vmatprep.subr.mxu0 %v211_v0 }
  0x3b   :  { %169 = vmatpush3.xpose.msra.mxu0 %v33_v12 }
  0x3c   :  { %170 = vmatprep.subr.mxu0 %v211_v0 }
  0x3f   :  { %171 = vmatpush3.xpose.msra.mxu0 %v32_v13 }
  0x40   :  { %172 = vmatprep.subr.mxu0 %v211_v0 }
  0x43   :  { %173 = vmatpush3.xpose.msra.mxu0 %v31_v14 }
  0x44   :  { %174 = vmatprep.subr.mxu0 %v211_v0 }
  0x47   :  { %175 = vmatpush3.xpose.msra.mxu0 %v30_v15 }
  0x48   :  { %176 = vmatprep.subr.mxu0 %v211_v0 }
  0x4b   :  { %177 = vmatpush3.xpose.msra.mxu0 %v29_v16 }
  0x4e   :  { %179 = vmatmul.mubr.f32.vlgmr.msra.gmra.mxu0 %v28_v17 }
 0x10e   :  { %v118_v19 = vpop.f32.mrf.mxu0 }
 0x10f   :  { %v119_v20 = vadd.f32 %v128_v18, %v118_v19 }
 0x110   :  { %v180_v21 = vpop.f32.mrf.mxu0 }
 0x111   :  { %122 = vst [vmem:[%s248_s3] sm:$0xff] %v119_v20 }
 0x112   :  { %127 = vsyncpa [#allocation3], 1 }

</bundles_post_ra>
